<compile_context>
chip_gen: v7x
topology: tpu7x:2x2x1
jax: 0.10.0
libtpu: 0.0.40
codegen_flags: <defaults>
</compile_context>

<pallas_src>
import numpy as np
import jax
import jax.numpy as jnp
from jax.experimental import pallas as pl
from jax.experimental.pallas import tpu as pltpu


def _round_up(x, m):
    return ((x + m - 1) // m) * m


def _vmem_capacity_bytes():
    """Best-effort VMEM capacity query (falls back to v5e/v6e's 128 MiB)."""
    try:
        info = pltpu.get_tpu_info()
        for name in ("vmem_capacity_bytes", "vmem_size_bytes", "vmem_bytes"):
            cap = getattr(info, name, None)
            if cap:
                return int(cap)
    except Exception:
        pass
    return 128 * 1024 * 1024


def _balanced_ce_kernel(labels_ref, wi_ref, logits_ref, num_ref, den_ref):
    t = pl.program_id(1)

    # init per-lane accumulators (output blocks are resident across the t axis)
    @pl.when(t == 0)
    def _():
        num_ref[...] = jnp.zeros_like(num_ref)
        den_ref[...] = jnp.zeros_like(den_ref)

    # native-dtype DMA; upcast in-register after the VMEM load
    logits = logits_ref[...].astype(jnp.float32)       # (TB, Cp) f32
    labels = labels_ref[...]                           # (TB, 1) i32, -1 == pad row
    wi = wi_ref[...]                                   # (TB, 1) f32, 0 on pad rows

    # numerically stable logsumexp along the class (lane) axis
    m = jnp.max(logits, axis=-1, keepdims=True)        # (TB, 1)
    z = logits - m
    lse = jnp.log(jnp.sum(jnp.exp(z), axis=-1, keepdims=True))
    lsepm = lse + m                                     # (TB, 1)

    # one-vreg-row class iota; broadcasting against (TB,1) labels builds the
    # one-hot mask; select drops the per-row target weight at the target lane.
    class_idx = jax.lax.broadcasted_iota(jnp.int32, (1, logits.shape[-1]), 1)
    ow = jnp.where(class_idx == labels, wi, jnp.float32(0.0))   # (TB, Cp)

    # -logp[i,j] = lse_i + m_i - logits[i,j]   (only the target lane survives ow)
    nll = lsepm - logits                                # (TB, Cp)

    # sublane-only (axis=0) reductions into per-lane accumulators; the single
    # cross-lane reduce + divide happens once in the wrapper.
    num_part = jnp.sum(ow * nll, axis=0, keepdims=True)   # (1, Cp)
    den_part = jnp.sum(ow, axis=0, keepdims=True)          # (1, Cp)
    num_ref[...] += num_part.reshape(num_ref.shape)
    den_ref[...] += den_part.reshape(den_ref.shape)


def balanced_loss(logits, labels, samples_per_class, beta=0.999,
                  class_balanced=True, loss_type="cross_entropy"):
    """Class-balanced cross-entropy loss (forward pass only)."""
    assert loss_type == "cross_entropy"
    batch_size, num_classes = logits.shape

    if class_balanced:
        if samples_per_class is None:
            raise ValueError("blrblr")
        effective_num = 1.0 - np.power(beta, samples_per_class)
        weights = (1.0 - beta) / np.array(effective_num)
        weights = weights / np.sum(weights) * num_classes
        weights = jnp.asarray(weights, dtype=jnp.float32)
    else:
        # unweighted CE == per-class weight of 1.0 (same kernel path)
        weights = jnp.ones((num_classes,), dtype=jnp.float32)

    itemsize = jnp.dtype(logits.dtype).itemsize
    # ---- lane-dense class axis: pad C up to a multiple of 128 ----
    c_pad = max(_round_up(num_classes, 128), 128)
    # packed-sublane multiple of the native input dtype (8/f32, 16/bf16, 32/i8)
    sub_mult = max(8, 32 // itemsize)

    # ---- generation-aware tile + VMEM budget ----
    vmem_cap = _vmem_capacity_bytes()
    if vmem_cap <= 64 * 1024 * 1024:        # v7x: 64 MiB VMEM per TensorCore
        tile_target = 8 * 1024 * 1024
        vmem_limit = 40 * 1024 * 1024
    else:                                    # v5e / v6e: 128 MiB VMEM
        tile_target = 16 * 1024 * 1024
        vmem_limit = 80 * 1024 * 1024

    tb_cap = max(sub_mult,
                 (tile_target // (c_pad * itemsize)) // sub_mult * sub_mult)
    tb = min(tb_cap, _round_up(batch_size, sub_mult))

    # 2-way "parallel" split so both v7x TensorCores stream half of the batch;
    # harmless (serial) on single-TC chips.
    total_tiles = pl.cdiv(batch_size, tb)
    num_parts = 2 if total_tiles >= 2 else 1
    tiles_per_part = pl.cdiv(total_tiles, num_parts)
    b_pad = num_parts * tiles_per_part * tb

    # ensure double-buffered logits tiles fit the scoped limit with headroom
    tile_bytes = tb * c_pad * itemsize
    vmem_limit = max(vmem_limit, 2 * tile_bytes + (4 << 20))
    vmem_limit = min(vmem_limit, max(vmem_cap - (8 << 20),
                                     2 * tile_bytes + (2 << 20)))

    # softmax-neutral padding value (finite; exp underflows to 0 after max-sub)
    neg = float(jnp.finfo(logits.dtype).min) / 2.0

    logits_p = logits
    if b_pad != batch_size or c_pad != num_classes:
        logits_p = jnp.pad(
            logits,
            ((0, b_pad - batch_size), (0, c_pad - num_classes)),
            constant_values=neg)

    labels_i32 = labels.astype(jnp.int32)
    # per-row target-class weight: tiny XLA gather, fully hidden in the wrapper
    wi = jnp.take(weights, labels_i32, axis=0).astype(jnp.float32)
    if b_pad != batch_size:
        labels_i32 = jnp.pad(labels_i32, (0, b_pad - batch_size),
                             constant_values=-1)       # -1 => matches no class
        wi = jnp.pad(wi, (0, b_pad - batch_size), constant_values=0.0)
    labels_2d = labels_i32.reshape(b_pad, 1)
    wi_2d = wi.reshape(b_pad, 1)

    tpp = tiles_per_part  # captured statically by the index_maps

    num_p, den_p = pl.pallas_call(
        _balanced_ce_kernel,
        out_shape=(
            jax.ShapeDtypeStruct((num_parts, 1, c_pad), jnp.float32),
            jax.ShapeDtypeStruct((num_parts, 1, c_pad), jnp.float32),
        ),
        grid_spec=pltpu.PrefetchScalarGridSpec(
            num_scalar_prefetch=0,
            grid=(num_parts, tiles_per_part),
            in_specs=[
                pl.BlockSpec((tb, 1), lambda p, t: (p * tpp + t, 0)),      # labels
                pl.BlockSpec((tb, 1), lambda p, t: (p * tpp + t, 0)),      # wi
                pl.BlockSpec((tb, c_pad), lambda p, t: (p * tpp + t, 0)),  # logits
            ],
            out_specs=[
                pl.BlockSpec((1, 1, c_pad), lambda p, t: (p, 0, 0)),  # num partials
                pl.BlockSpec((1, 1, c_pad), lambda p, t: (p, 0, 0)),  # den partials
            ],
        ),
        compiler_params=pltpu.CompilerParams(
            dimension_semantics=("parallel", "arbitrary"),
            vmem_limit_bytes=int(vmem_limit),
        ),
    )(labels_2d, wi_2d, logits_p)

    # single cross-lane reduce + divide (PyTorch weighted-mean reduction)
    return jnp.sum(num_p) / jnp.sum(den_p)


if __name__ == "__main__":
    key = jax.random.PRNGKey(0)
    k_logits, k_labels = jax.random.split(key)

    batch_size = 8
    num_classes = 16

    logits = jax.random.normal(k_logits, (batch_size, num_classes),
                               dtype=jnp.float32)
    labels = jax.random.randint(k_labels, (batch_size,), 0, num_classes,
                                dtype=jnp.int32)
    # deterministic per-class sample counts (imbalanced)
    samples_per_class = [100 * (i + 1) for i in range(num_classes)]

    loss = balanced_loss(logits, labels, samples_per_class,
                         beta=0.999, class_balanced=True,
                         loss_type="cross_entropy")
    loss = jax.block_until_ready(loss)

    # pure-JAX reference check of the same math
    eff = 1.0 - np.power(0.999, samples_per_class)
    w = (1.0 - 0.999) / np.array(eff)
    w = w / np.sum(w) * num_classes
    w = jnp.asarray(w, dtype=jnp.float32)
    logp = jax.nn.log_softmax(logits, axis=-1)
    nll = -jnp.take_along_axis(logp, labels[:, None], axis=-1)[:, 0]
    wi = w[labels]
    ref = jnp.sum(wi * nll) / jnp.sum(wi)
    assert jnp.allclose(loss, ref, atol=1e-5, rtol=1e-5), (loss, ref)

    print("KERNEL_OK")
</pallas_src>

<mosaic_0001>
module attributes {stable_mosaic.version = 11 : i64} {
  func.func @_balanced_ce_kernel(%arg0: i32, %arg1: i32, %arg2: memref<8x1xi32, #tpu.memory_space<vmem>>, %arg3: memref<8x1xf32, #tpu.memory_space<vmem>>, %arg4: memref<8x128xf32, #tpu.memory_space<vmem>>, %arg5: memref<1x1x128xf32, #tpu.memory_space<vmem>>, %arg6: memref<1x1x128xf32, #tpu.memory_space<vmem>>) attributes {dimension_semantics = [#tpu.dimension_semantics<parallel>, #tpu.dimension_semantics<arbitrary>], iteration_bounds = array<i64: 1, 1>, scalar_prefetch = 0 : i64, scratch_operands = 0 : i64, tpu.core_type = #tpu.core_type<tc>, window_params = [{transform_indices = @transform_0, window_bounds = array<i64: 8, 1>}, {transform_indices = @transform_1, window_bounds = array<i64: 8, 1>}, {transform_indices = @transform_2, window_bounds = array<i64: 8, 128>}, {transform_indices = @transform_3, window_bounds = array<i64: 1, 1, 128>}, {transform_indices = @transform_4, window_bounds = array<i64: 1, 1, 128>}]} {
    %c0_i32 = arith.constant 0 : i32
    %0 = arith.cmpi eq, %arg1, %c0_i32 : i32
    %1 = arith.extui %0 : i1 to i32
    %c0_i32_0 = arith.constant 0 : i32
    %2 = arith.cmpi ne, %1, %c0_i32_0 : i32
    scf.if %2 {
      %cst_22 = arith.constant 0.000000e+00 : f32
      %38 = vector.broadcast %cst_22 : f32 to vector<1x1x128xf32>
      %c0_23 = arith.constant 0 : index
      %c0_24 = arith.constant 0 : index
      %c0_25 = arith.constant 0 : index
      %39 = vector.load %arg5[%c0_23, %c0_24, %c0_25] : memref<1x1x128xf32, #tpu.memory_space<vmem>>, vector<1x1x128xf32>
      tpu.vector_store %arg5[%c0_23, %c0_24, %c0_25], %38 {strides = array<i32>} : memref<1x1x128xf32, #tpu.memory_space<vmem>>, vector<1x1x128xf32>,
      %cst_26 = arith.constant 0.000000e+00 : f32
      %40 = vector.broadcast %cst_26 : f32 to vector<1x1x128xf32>
      %c0_27 = arith.constant 0 : index
      %c0_28 = arith.constant 0 : index
      %c0_29 = arith.constant 0 : index
      %41 = vector.load %arg6[%c0_27, %c0_28, %c0_29] : memref<1x1x128xf32, #tpu.memory_space<vmem>>, vector<1x1x128xf32>
      tpu.vector_store %arg6[%c0_27, %c0_28, %c0_29], %40 {strides = array<i32>} : memref<1x1x128xf32, #tpu.memory_space<vmem>>, vector<1x1x128xf32>,
    } else {
    }
    %c0 = arith.constant 0 : index
    %c0_1 = arith.constant 0 : index
    %3 = vector.load %arg4[%c0, %c0_1] : memref<8x128xf32, #tpu.memory_space<vmem>>, vector<8x128xf32>
    %c0_2 = arith.constant 0 : index
    %c0_3 = arith.constant 0 : index
    %4 = vector.load %arg2[%c0_2, %c0_3] : memref<8x1xi32, #tpu.memory_space<vmem>>, vector<8x1xi32>
    %c0_4 = arith.constant 0 : index
    %c0_5 = arith.constant 0 : index
    %5 = vector.load %arg3[%c0_4, %c0_5] : memref<8x1xf32, #tpu.memory_space<vmem>>, vector<8x1xf32>
    %cst = arith.constant dense<0xFF800000> : vector<8xf32>
    %6 = vector.multi_reduction <maximumf>, %3, %cst [1] : vector<8x128xf32> to vector<8xf32>
    %7 = vector.shape_cast %6 : vector<8xf32> to vector<8x1xf32>
    %8 = vector.broadcast %7 : vector<8x1xf32> to vector<8x128xf32>
    %9 = arith.subf %3, %8 : vector<8x128xf32>
    %10 = math.exp %9 : vector<8x128xf32>
    %cst_6 = arith.constant dense<0.000000e+00> : vector<8xf32>
    %11 = vector.multi_reduction <add>, %10, %cst_6 [1] : vector<8x128xf32> to vector<8xf32>
    %12 = vector.shape_cast %11 : vector<8xf32> to vector<8x1xf32>
    %13 = math.log %12 : vector<8x1xf32>
    %14 = arith.addf %13, %7 : vector<8x1xf32>
    %15 = tpu.iota {dimensions = array<i32: 1>} : vector<1x128xi32>
    %16 = vector.broadcast %15 : vector<1x128xi32> to vector<8x128xi32>
    %17 = vector.broadcast %4 : vector<8x1xi32> to vector<8x128xi32>
    %18 = arith.cmpi eq, %16, %17 : vector<8x128xi32>
    %cst_7 = arith.constant 0.000000e+00 : f32
    %19 = vector.shape_cast %5 : vector<8x1xf32> to vector<8x1xf32>
    %20 = vector.broadcast %19 : vector<8x1xf32> to vector<8x128xf32>
    %21 = vector.broadcast %cst_7 : f32 to vector<8x128xf32>
    %22 = arith.select %18, %20, %21 : vector<8x128xi1>, vector<8x128xf32>
    %23 = vector.broadcast %14 : vector<8x1xf32> to vector<8x128xf32>
    %24 = arith.subf %23, %3 : vector<8x128xf32>
    %25 = arith.mulf %22, %24 : vector<8x128xf32>
    %cst_8 = arith.constant dense<0.000000e+00> : vector<128xf32>
    %26 = vector.multi_reduction <add>, %25, %cst_8 [0] : vector<8x128xf32> to vector<128xf32>
    %27 = vector.shape_cast %26 : vector<128xf32> to vector<1x128xf32>
    %cst_9 = arith.constant dense<0.000000e+00> : vector<128xf32>
    %28 = vector.multi_reduction <add>, %22, %cst_9 [0] : vector<8x128xf32> to vector<128xf32>
    %29 = vector.shape_cast %28 : vector<128xf32> to vector<1x128xf32>
    %c0_10 = arith.constant 0 : index
    %c0_11 = arith.constant 0 : index
    %c0_12 = arith.constant 0 : index
    %30 = vector.load %arg5[%c0_10, %c0_11, %c0_12] : memref<1x1x128xf32, #tpu.memory_space<vmem>>, vector<1x1x128xf32>
    %31 = vector.shape_cast %27 : vector<1x128xf32> to vector<1x1x128xf32>
    %32 = arith.addf %30, %31 : vector<1x1x128xf32>
    %c0_13 = arith.constant 0 : index
    %c0_14 = arith.constant 0 : index
    %c0_15 = arith.constant 0 : index
    %33 = vector.load %arg5[%c0_13, %c0_14, %c0_15] : memref<1x1x128xf32, #tpu.memory_space<vmem>>, vector<1x1x128xf32>
    tpu.vector_store %arg5[%c0_13, %c0_14, %c0_15], %32 {strides = array<i32>} : memref<1x1x128xf32, #tpu.memory_space<vmem>>, vector<1x1x128xf32>,
    %c0_16 = arith.constant 0 : index
    %c0_17 = arith.constant 0 : index
    %c0_18 = arith.constant 0 : index
    %34 = vector.load %arg6[%c0_16, %c0_17, %c0_18] : memref<1x1x128xf32, #tpu.memory_space<vmem>>, vector<1x1x128xf32>
    %35 = vector.shape_cast %29 : vector<1x128xf32> to vector<1x1x128xf32>
    %36 = arith.addf %34, %35 : vector<1x1x128xf32>
    %c0_19 = arith.constant 0 : index
    %c0_20 = arith.constant 0 : index
    %c0_21 = arith.constant 0 : index
    %37 = vector.load %arg6[%c0_19, %c0_20, %c0_21] : memref<1x1x128xf32, #tpu.memory_space<vmem>>, vector<1x1x128xf32>
    tpu.vector_store %arg6[%c0_19, %c0_20, %c0_21], %36 {strides = array<i32>} : memref<1x1x128xf32, #tpu.memory_space<vmem>>, vector<1x1x128xf32>,
    return
  }
  func.func @transform_0(%arg0: i32, %arg1: i32) -> (i32, i32) {
    %c1_i32 = arith.constant 1 : i32
    %0 = arith.muli %arg0, %c1_i32 : i32
    %1 = arith.addi %0, %arg1 : i32
    %c0_i32 = arith.constant 0 : i32
    %c0_i32_0 = arith.constant 0 : i32
    return %1, %c0_i32 : i32, i32
  }
  func.func @transform_1(%arg0: i32, %arg1: i32) -> (i32, i32) {
    %c1_i32 = arith.constant 1 : i32
    %0 = arith.muli %arg0, %c1_i32 : i32
    %1 = arith.addi %0, %arg1 : i32
    %c0_i32 = arith.constant 0 : i32
    %c0_i32_0 = arith.constant 0 : i32
    return %1, %c0_i32 : i32, i32
  }
  func.func @transform_2(%arg0: i32, %arg1: i32) -> (i32, i32) {
    %c1_i32 = arith.constant 1 : i32
    %0 = arith.muli %arg0, %c1_i32 : i32
    %1 = arith.addi %0, %arg1 : i32
    %c0_i32 = arith.constant 0 : i32
    %c0_i32_0 = arith.constant 0 : i32
    return %1, %c0_i32 : i32, i32
  }
  func.func @transform_3(%arg0: i32, %arg1: i32) -> (i32, i32, i32) {
    %c0_i32 = arith.constant 0 : i32
    %c0_i32_0 = arith.constant 0 : i32
    %c0_i32_1 = arith.constant 0 : i32
    return %arg0, %c0_i32, %c0_i32_0 : i32, i32, i32
  }
  func.func @transform_4(%arg0: i32, %arg1: i32) -> (i32, i32, i32) {
    %c0_i32 = arith.constant 0 : i32
    %c0_i32_0 = arith.constant 0 : i32
    %c0_i32_1 = arith.constant 0 : i32
    return %arg0, %c0_i32, %c0_i32_0 : i32, i32, i32
  }
}

</mosaic_0001>

<bundles_post_ra>
// kernel: tpu_custom_call.1
= control target key start
LH: loop header
LB: loop body
LE: loop exit
PB: predicated region body
PF: predicated region fallthrough
CT: control target
= control target key end

     0   :  { %10 = vsyncpa [#allocation3], 0  ;;  %s369_s0 = inlined_call_operand.hbm [shape: s32[8,1], index: 0, kind: input, shape index: {}]   ;;  %s370_s1 = inlined_call_operand.hbm [shape: f32[8,1], index: 1, kind: input, shape index: {}]   ;;  %s371_s2 = inlined_call_operand.hbm [shape: f32[8,128], index: 2, kind: input, shape index: {}]   ;;  %s372_s3 = inlined_call_operand.hbm [shape: f32[1,1,128], index: 3, kind: output, shape index: {0}]   ;;  %s373_s4 = inlined_call_operand.hbm [shape: f32[1,1,128], index: 4, kind: output, shape index: {1}]  }
   0x1   :  { %11 = vsyncpa [#allocation6], 0 }
   0x2   :  { %12 = vsyncpa [#allocation4], 0 }
   0x3   :  { %13 = vsyncpa [#allocation10], 0  ;;  %s277_s15 = smov [#allocation5]   ;;  %s278_s17 = smov [#allocation2]  }
   0x4   :  { %s36_s16 = sshll.u32 %s277_s15, 4  ;;  %s23_s18 = sshll.u32 %s278_s17, 4  ;;  %s37_s16 = int_to_ptr.vmem [resolvable:$true] %s36_s16  ;;  %s24_s18 = int_to_ptr.vmem [resolvable:$true] %s23_s18 }
   0x5   :  { %s159_s21 = scalar_lea.hbm %s370_s1, 128 }
   0x6   :  { %p160_p0 = scmp.ne.s32.totalorder %s370_s1, %s159_s21  ;;  %p163_p1 = scmp.lt.u32.totalorder %s159_s21, %s370_s1 }
   0x8   :  { %p165_p2 = pnand %p163_p1, %p160_p0 }
   0xa   :  { %168 = shalt.err (!%p165_p2)
}
   0xb   :  { %s169_s26 = scalar_lea.vmem %s37_s16, 128  ;;  %p174_p4 = scmp.lt.s32.totalorder %s37_s16, %s37_s16 }
   0xc   :  { %p170_p3 = scmp.ne.s32.totalorder %s37_s16, %s169_s26  ;;  %p175_p5 = scmp.lt.s32.totalorder %s169_s26, %s169_s26 }
   0xe   :  { %p176_p6 = por %p175_p5, %p174_p4 }
  0x10   :  { %p177_p7 = pnand %p176_p6, %p170_p3 }
  0x12   :  { %180 = shalt.err (!%p177_p7)
}
  0x13   :  { %39 = dma.hbm_to_vmem [thread:$0]  %s370_s1, 128, %s37_s16, [#allocation6]  }
  0x14   :  { %s181_s5 = scalar_lea.hbm %s369_s0, 128 }
  0x15   :  { %p182_p8 = scmp.ne.s32.totalorder %s369_s0, %s181_s5  ;;  %p185_p9 = scmp.lt.u32.totalorder %s181_s5, %s369_s0 }
  0x17   :  { %p187_p10 = pnand %p185_p9, %p182_p8 }
  0x19   :  { %190 = shalt.err (!%p187_p10)
}
  0x1a   :  { %s191_s10 = scalar_lea.vmem %s24_s18, 128  ;;  %p196_p12 = scmp.lt.s32.totalorder %s24_s18, %s24_s18 }
  0x1b   :  { %p192_p11 = scmp.ne.s32.totalorder %s24_s18, %s191_s10  ;;  %p197_p13 = scmp.lt.s32.totalorder %s191_s10, %s191_s10 }
  0x1d   :  { %p198_p0 = por %p197_p13, %p196_p12 }
  0x1f   :  { %p199_p1 = pnand %p198_p0, %p192_p11 }
  0x21   :  { %202 = shalt.err (!%p199_p1)
}
  0x22   :  { %26 = dma.hbm_to_vmem [thread:$0]  %s369_s0, 128, %s24_s18, [#allocation3]  }
  0x23   :  { %s279_s12 = smov [#allocation7]   ;;  %s203_s16 = scalar_lea.hbm %s371_s2, 128 }
  0x24   :  { %s49_s13 = sshll.u32 %s279_s12, 4  ;;  %p204_p2 = scmp.ne.s32.totalorder %s371_s2, %s203_s16  ;;  %s50_s13 = int_to_ptr.vmem [resolvable:$true] %s49_s13 }
  0x25   :  { %p207_p3 = scmp.lt.u32.totalorder %s203_s16, %s371_s2 }
  0x27   :  { %p209_p4 = pnand %p207_p3, %p204_p2 }
  0x29   :  { %212 = shalt.err (!%p209_p4)
}
  0x2a   :  { %s213_s22 = scalar_lea.vmem %s50_s13, 128  ;;  %p218_p6 = scmp.lt.s32.totalorder %s50_s13, %s50_s13 }
  0x2b   :  { %p214_p5 = scmp.ne.s32.totalorder %s50_s13, %s213_s22  ;;  %p219_p7 = scmp.lt.s32.totalorder %s213_s22, %s213_s22 }
  0x2d   :  { %p220_p8 = por %p219_p7, %p218_p6 }
  0x2f   :  { %p221_p9 = pnand %p220_p8, %p214_p5 }
  0x31   :  { %224 = shalt.err (!%p221_p9)
}
  0x32   :  { %52 = dma.hbm_to_vmem [thread:$0]  %s371_s2, 128, %s50_s13, [#allocation6]  }
  0x33   :  { %269 = dma.done.wait [#allocation3], 128  }
  0x34   :  { %270 = vsyncadd [#allocation3], 4294967168 }
  0x35   :  { %271 = dma.done.wait [#allocation6], 256  }
  0x36   :  { %272 = vsyncadd [#allocation6], 4294967040  ;;  %v71_v0 = vld [vmem:[#allocation7] sm:$0xff]  ;;  %v72_v1 = vld [vmem:[#allocation2] sm:$0xff]  ;;  %v280_v2 = vmov 0   ;;  %v84_v8 = vlaneseq  ;;  %v281_v16 = vmov 0.0  }
  0x37   :  { %74 = vmax.xlane.f32.xlu0 %v71_v0  ;;  %153 = vset.pattern.permute.xlu1 %v280_v2  ;;  %v73_v3 = vld [vmem:[#allocation5] sm:$0xff]  ;;  %69 = vst [vmem:[#allocation8] sm:$0x1] %v281_v16  ;;  %70 = vst [vmem:[#allocation9] sm:$0x1] %v281_v16  ;;  %s282_s2 = smov [#allocation9]  }
  0x38   :  { %154 = vset.pattern.permute.xlu0 %v280_v2  ;;  %87 = vperm.xlu1 %153, %v72_v1   ;;  %v85_v10 = vand.u32 127, %v84_v8  ;;  %s132_s23 = sshll.u32 %s282_s2, 4  ;;  %s133_s23 = int_to_ptr.vmem [resolvable:$true] %s132_s23 }
  0x39   :  { %s225_s24 = scalar_lea.vmem %s133_s23, 16  ;;  %s229_s25 = scalar_lea.vmem %s133_s23, 32 }
  0x3a   :  { %p226_p10 = scmp.ne.s32.totalorder %s133_s23, %s225_s24  ;;  %p230_p11 = scmp.lt.s32.totalorder %s133_s23, %s133_s23 }
  0x3b   :  { %p231_p12 = scmp.lt.s32.totalorder %s229_s25, %s225_s24 }
  0x3c   :  { %92 = vperm.xlu1 %153, %v73_v3  }
  0x3d   :  { %p232_p13 = por %p231_p12, %p230_p11 }
  0x3e   :  { %v113_v20 = vld [vmem:[#allocation9] sm:$0x1] }
  0x3f   :  { %p233_p0 = pnand %p232_p13, %p226_p10 }
  0xb7   :  { %v88_v9 = vpop.permute.xlu1 %87 }
  0xb8   :  { %vm89_vm0 = vcmp.eq.s32.totalorder %v85_v10, %v88_v9 }
  0xbb   :  { %v93_v11 = vpop.permute.xlu1 %92 }
  0xbc   :  { %v95_v12 = vsel %vm89_vm0, %v93_v11, 0.0 }
  0xbd   :  { %v104_v13 = vrot.slane %v95_v12, 4 }
  0xbf   :  { %v105_v14 = vadd.f32 %v104_v13, %v95_v12 }
  0xc1   :  { %v106_v15 = vrot.slane %v105_v14, 2 }
  0xc3   :  { %v107_v17 = vadd.f32 %v106_v15, %v105_v14 }
  0xc4   :  { %v75_v4 = vpop.xlane.xlu0 %74 }
  0xc5   :  { %v76_v5 = vsub.f32 %v71_v0, %v75_v4  ;;  %v108_v18 = vrot.slane %v107_v17, 1 }
  0xc7   :  { %v77_v6 = vmul.f32 1.442695, %v76_v5  ;;  %v109_v19 = vadd.f32 %v108_v18, %v107_v17 }
  0xc9   :  { %155 = vpow2.f32 %v77_v6  ;;  %v114_v21 = vadd.f32 %v113_v20, %v109_v19 }
  0xcb   :  { %115 = vst [vmem:[#allocation9] sm:$0x1] %v114_v21 }
  0xd3   :  { %v156_v7 = vpop.eup %155 }
  0xd4   :  { %79 = vadd.xlane.f32.xlu0 %v156_v7 }
  0xd5   :  { %236 = shalt.err (!%p233_p0)
}
  0xd6   :  { %s237_s28 = scalar_lea.hbm %s373_s4, 16 }
  0xd7   :  { %p238_p1 = scmp.ne.s32.totalorder %s373_s4, %s237_s28  ;;  %p241_p2 = scmp.lt.u32.totalorder %s237_s28, %s373_s4 }
  0xd9   :  { %p243_p3 = pnand %p241_p2, %p238_p1 }
  0xdb   :  { %246 = shalt.err (!%p243_p3)
}
  0xdc   :  { %135 = dma.vmem_to_hbm [thread:$0]  %s133_s23, 16, %s373_s4, [#allocation10]   ;;  %v110_v33 = vld [vmem:[#allocation8] sm:$0x1] }
  0xdd   :  { %s283_s9 = smov [#allocation8]  }
  0xde   :  { %s122_s10 = sshll.u32 %s283_s9, 4  ;;  %s123_s10 = int_to_ptr.vmem [resolvable:$true] %s122_s10 }
  0xdf   :  { %s247_s4 = scalar_lea.vmem %s123_s10, 16  ;;  %s251_s1 = scalar_lea.vmem %s123_s10, 32 }
  0xe0   :  { %p248_p4 = scmp.ne.s32.totalorder %s123_s10, %s247_s4  ;;  %p252_p5 = scmp.lt.s32.totalorder %s123_s10, %s123_s10 }
  0xe1   :  { %p253_p6 = scmp.lt.s32.totalorder %s251_s1, %s247_s4 }
  0xe3   :  { %p254_p7 = por %p253_p6, %p252_p5 }
  0xe5   :  { %p255_p8 = pnand %p254_p7, %p248_p4 }
 0x161   :  { %v80_v22 = vpop.xlane.xlu0 %79 }
 0x162   :  { %157 = vlog2.f32 %v80_v22 }
 0x16c   :  { %v158_v23 = vpop.eup %157 }
 0x16d   :  { %v82_v24 = vmul.f32 0.6931472, %v158_v23 }
 0x16f   :  { %v83_v25 = vadd.f32 %v82_v24, %v75_v4 }
 0x171   :  { %v96_v26 = vsub.f32 %v83_v25, %v71_v0 }
 0x173   :  { %v97_v27 = vmul.f32 %v96_v26, %v95_v12 }
 0x175   :  { %v98_v28 = vrot.slane %v97_v27, 4 }
 0x177   :  { %v99_v29 = vadd.f32 %v98_v28, %v97_v27 }
 0x179   :  { %v100_v30 = vrot.slane %v99_v29, 2 }
 0x17b   :  { %v101_v31 = vadd.f32 %v100_v30, %v99_v29 }
 0x17d   :  { %v102_v32 = vrot.slane %v101_v31, 1 }
 0x17f   :  { %v103_v34 = vadd.f32 %v102_v32, %v101_v31 }
 0x181   :  { %v111_v35 = vadd.f32 %v110_v33, %v103_v34 }
 0x183   :  { %112 = vst [vmem:[#allocation8] sm:$0x1] %v111_v35 }
 0x184   :  { %258 = shalt.err (!%p255_p8)
}
 0x185   :  { %s259_s13 = scalar_lea.hbm %s372_s3, 16 }
 0x186   :  { %p260_p9 = scmp.ne.s32.totalorder %s372_s3, %s259_s13  ;;  %p263_p10 = scmp.lt.u32.totalorder %s259_s13, %s372_s3 }
 0x188   :  { %p265_p11 = pnand %p263_p10, %p260_p9 }
 0x18a   :  { %268 = shalt.err (!%p265_p11)
}
 0x18b   :  { %125 = dma.vmem_to_hbm [thread:$0]  %s123_s10, 16, %s372_s3, [#allocation4]  }
 0x18c   :  { %273 = dma.done.wait [#allocation4], 16  }
 0x18d   :  { %274 = vsyncadd [#allocation4], 4294967280 }
 0x18e   :  { %275 = dma.done.wait [#allocation10], 16  }
 0x18f   :  { %276 = vsyncadd [#allocation10], 4294967280 }
 0x190   :  { %142 = vsyncpa [#allocation3], 1 }
 0x191   :  { %143 = vsyncpa [#allocation6], 1 }
 0x192   :  { %144 = vsyncpa [#allocation4], 1 }
 0x193   :  { %145 = vsyncpa [#allocation10], 1 }

</bundles_post_ra>
